<compile_context>
chip_gen: v7x
topology: tpu7x:2x2x1
jax: 0.10.0
libtpu: 0.0.40
codegen_flags: <defaults>
</compile_context>

<pallas_src>
import functools

import jax
import jax.numpy as jnp
from jax import lax
from jax.experimental import pallas as pl
from jax.experimental.pallas import tpu as pltpu


def _round_up(x, m):
    return -(-x // m) * m


def _resident_spec(shape):
    """Constant-index (resident) weight block; single-buffered when supported."""
    idx = lambda *_: (0,) * len(shape)
    try:
        return pl.BlockSpec(shape, idx, pipeline_mode=pl.Buffered(1))
    except Exception:  # older jax without pipeline_mode / Buffered
        return pl.BlockSpec(shape, idx)


def _make_lstm_kernel(hidden_size, emb_dim, time_chunk, batch_tile, n_chains,
                      seq_len, seq_len_padded, compute_dtype, unroll):
    """LSTM recurrence + fused input projection + final FC (static sizes)."""
    H = hidden_size
    E = emb_dim
    TC = time_chunk
    TB = batch_tile
    G = 4 * H
    sub = TB // n_chains
    mask_time = seq_len_padded != seq_len  # only emit masking if time was padded

    def kernel(x_ref, w_ih_ref, b_ref, w_hh_ref, w_fc_ref, b_fc_ref, out_ref,
               xp_ref, h_ref, c_ref):
        # x_ref   : (TC, TB, E)  streamed embedding chunk (compute_dtype)
        # w_ih_ref: (E, 4H)      resident fused input->gates weights
        # b_ref   : (1, 4H)      fused bias (b_ih + b_hh), f32
        # w_hh_ref: (H, 4H)      resident fused hidden->gates weights
        # w_fc_ref: (H, Cp)      final linear weight (lane-padded)
        # b_fc_ref: (1, Cp)      final linear bias (lane-padded), f32
        # out_ref : (TB, Cp)     logits block (written on the last time chunk)
        # xp_ref  : (TC, TB, 4H) f32 scratch: per-chunk input projection
        # h_ref, c_ref: (TB, H)  f32 VMEM scratch carrying LSTM state
        t_chunk = pl.program_id(1)

        @pl.when(t_chunk == 0)
        def _init():
            h_ref[...] = jnp.zeros_like(h_ref)
            c_ref[...] = jnp.zeros_like(c_ref)

        # Fused, per-chunk input projection: ONE lane-dense GEMM, off the
        # recurrence critical path (hides under the pipeline).
        x = x_ref[...].reshape(TC * TB, E)
        xp_ref[...] = (
            jnp.dot(x, w_ih_ref[...], preferred_element_type=jnp.float32)
            + b_ref[...]
        ).reshape(TC, TB, G)

        w_hh = w_hh_ref[...]  # hoisted out of the time loop
        h_all = h_ref[...]
        c_all = c_ref[...]
        offsets = tuple(ci * sub for ci in range(n_chains))
        carry0 = tuple((h_all[lo:lo + sub], c_all[lo:lo + sub])
                       for lo in offsets)

        def make_step(masked):
            def step(j, carry):
                xp_j = xp_ref[j]  # (TB, 4H) f32
                nxt = []
                # Independent batch sub-chains: the LLO scheduler interleaves
                # their MXU/EUP/VPU work to fill the latency-bound recurrence.
                for ci in range(n_chains):
                    lo = offsets[ci]
                    h, c = carry[ci]
                    gates = xp_j[lo:lo + sub] + jnp.dot(
                        h.astype(compute_dtype), w_hh,
                        preferred_element_type=jnp.float32)
                    # Gate order (i, f, o, g): one contiguous sigmoid region,
                    # one tanh region (all gate math in f32 — v5e-safe).
                    sig = jax.nn.sigmoid(gates[:, :3 * H])
                    i_g = sig[:, 0 * H:1 * H]
                    f_g = sig[:, 1 * H:2 * H]
                    o_g = sig[:, 2 * H:3 * H]
                    g_g = jnp.tanh(gates[:, 3 * H:])
                    c_n = f_g * c + i_g * g_g
                    h_n = o_g * jnp.tanh(c_n)
                    if masked:
                        valid = (t_chunk * TC + j) < seq_len
                        h_n = jnp.where(valid, h_n, h)
                        c_n = jnp.where(valid, c_n, c)
                    nxt.append((h_n, c_n))
                return tuple(nxt)
            return step

        def run(masked, carry):
            return lax.fori_loop(0, TC, make_step(masked), carry, unroll=unroll)

        if mask_time:
            # Padded time steps can only live in the final chunk, so only that
            # chunk pays for the per-step selects.
            carry = lax.cond(
                t_chunk == pl.num_programs(1) - 1,
                lambda cr: run(True, cr),
                lambda cr: run(False, cr),
                carry0,
            )
        else:
            carry = run(False, carry0)

        for lo, (h_n, c_n) in zip(offsets, carry):
            h_ref[lo:lo + sub, :] = h_n
            c_ref[lo:lo + sub, :] = c_n

        @pl.when(t_chunk == pl.num_programs(1) - 1)
        def _finalize():
            h_fin = h_ref[...]
            out_ref[...] = (
                jnp.dot(h_fin.astype(compute_dtype), w_fc_ref[...],
                        preferred_element_type=jnp.float32)
                + b_fc_ref[...]
            )

    return kernel


@functools.partial(
    jax.jit, static_argnames=("batch_tile", "time_chunk", "compute_dtype"))
def comment_classifier_forward(input_ids, params, *, batch_tile=128,
                               time_chunk=32, compute_dtype=jnp.bfloat16):
    """input_ids: (B, T) int32 token ids.  Returns (B, C) f32 logits."""
    emb_table = params["embedding"]  # (V, E), row 0 zero (padding_idx=0)
    w_ih = params["w_ih"]            # (E, 4H) fused, PyTorch gate order i,f,g,o
    w_hh = params["w_hh"]            # (H, 4H)
    b = params["b"]                  # (1, 4H)  (= b_ih + b_hh)
    w_fc = params["w_fc"]            # (H, C)
    b_fc = params["b_fc"]            # (1, C)

    B, T = input_ids.shape
    E = emb_table.shape[1]
    H = w_hh.shape[0]
    G = 4 * H
    C = w_fc.shape[1]
    C_pad = _round_up(max(C, 128), 128)  # lane-dense logits store

    cdt = jnp.dtype(compute_dtype)
    sub_tile = 16 if cdt.itemsize < 4 else 8  # sublane tile of streamed block

    # ---------------- tile selection (VMEM-budget aware) ----------------
    B_round = _round_up(B, sub_tile)
    TB = _round_up(min(batch_tile, B_round), sub_tile)
    # v7x: prefer >=2 batch tiles so both TensorCores get work (batch axis is
    # the only "parallel" grid axis).
    if B_round // TB < 2 and TB >= 2 * sub_tile:
        TB = _round_up(TB // 2, sub_tile)
    TC = max(1, min(time_chunk, T))

    def est_bytes(tb, tc):
        stream = 2 * tc * tb * E * cdt.itemsize                 # dbl-buffered emb
        weights = (E * G + H * G + H * C_pad) * cdt.itemsize + (G + C_pad) * 4
        outb = 2 * tb * C_pad * 4
        scratch = tc * tb * G * 4 + 2 * tb * H * 4              # xp + h + c
        return stream + weights + outb + scratch

    budget = 40 * 2 ** 20  # conservative for v7x's 64 MiB VMEM
    while est_bytes(TB, TC) > budget:
        if TC > 8:
            TC = max(8, TC // 2)
        elif TB > 2 * sub_tile:
            TB = _round_up(TB // 2, sub_tile)
        elif TC > 1:
            TC = max(1, TC // 2)
        elif TB > sub_tile:
            TB = sub_tile
        else:
            break

    n_chains = 2 if (TB >= 16 and TB % 16 == 0) else 1
    unroll = min(TC, 8)

    B_pad = _round_up(B, TB)
    T_pad = _round_up(T, TC)

    # ---------------- XLA-side glue ----------------
    # Embedding gather emitted directly time-major (T, B, E); MXU/DMA operands
    # in compute_dtype (bf16 by default), all in-kernel gate math stays f32.
    emb_tb = jnp.take(emb_table, input_ids.T, axis=0).astype(cdt)
    if (B_pad - B) or (T_pad - T):
        emb_tb = jnp.pad(emb_tb, ((0, T_pad - T), (0, B_pad - B), (0, 0)))

    # Reorder fused gate columns (i, f, g, o) -> (i, f, o, g).
    def reorder(a):
        return jnp.concatenate(
            [a[..., :2 * H], a[..., 3 * H:4 * H], a[..., 2 * H:3 * H]], axis=-1)

    w_ih_k = reorder(w_ih).astype(cdt)
    w_hh_k = reorder(w_hh).astype(cdt)
    b_k = reorder(b).astype(jnp.float32)

    # Pad logits lane dim to 128 (unmasked lane-dense vst); slice back below.
    w_fc_k = jnp.zeros((H, C_pad), cdt).at[:, :C].set(w_fc.astype(cdt))
    b_fc_k = jnp.zeros((1, C_pad), jnp.float32).at[:, :C].set(
        b_fc.astype(jnp.float32))

    kernel = _make_lstm_kernel(H, E, TC, TB, n_chains, T, T_pad, cdt, unroll)
    grid = (B_pad // TB, T_pad // TC)
    vmem_limit = int(min(64 * 2 ** 20,
                         max(32 * 2 ** 20, int(est_bytes(TB, TC) * 1.3))))

    out = pl.pallas_call(
        kernel,
        out_shape=jax.ShapeDtypeStruct((B_pad, C_pad), jnp.float32),
        grid_spec=pltpu.PrefetchScalarGridSpec(
            num_scalar_prefetch=0,
            grid=grid,
            in_specs=[
                # Streamed per-(batch tile, time chunk) embedding block.
                pl.BlockSpec((TC, TB, E), lambda bi, ti: (ti, bi, 0)),
                # Resident weights/biases (constant index map, single-buffered).
                _resident_spec((E, G)),
                _resident_spec((1, G)),
                _resident_spec((H, G)),
                _resident_spec((H, C_pad)),
                _resident_spec((1, C_pad)),
            ],
            out_specs=pl.BlockSpec((TB, C_pad), lambda bi, ti: (bi, 0)),
            scratch_shapes=[
                pltpu.VMEM((TC, TB, G), jnp.float32),  # per-chunk x projection
                pltpu.VMEM((TB, H), jnp.float32),      # h state
                pltpu.VMEM((TB, H), jnp.float32),      # c state
            ],
        ),
        compiler_params=pltpu.CompilerParams(
            dimension_semantics=("parallel", "arbitrary"),
            vmem_limit_bytes=vmem_limit,
        ),
    )(emb_tb, w_ih_k, b_k, w_hh_k, w_fc_k, b_fc_k)

    return out[:B, :C]


def reference_forward(input_ids, params):
    """Pure-JAX reference replicating PyTorch LSTM semantics (gate order i,f,g,o)."""
    emb = jnp.take(params["embedding"], input_ids, axis=0)  # (B, T, E)
    B = emb.shape[0]
    H = params["w_hh"].shape[0]
    w_ih, w_hh, b = params["w_ih"], params["w_hh"], params["b"]

    def step(carry, x_t):
        h, c = carry
        gates = x_t @ w_ih + h @ w_hh + b
        i = jax.nn.sigmoid(gates[:, 0 * H:1 * H])
        f = jax.nn.sigmoid(gates[:, 1 * H:2 * H])
        g = jnp.tanh(gates[:, 2 * H:3 * H])
        o = jax.nn.sigmoid(gates[:, 3 * H:4 * H])
        c = f * c + i * g
        h = o * jnp.tanh(c)
        return (h, c), None

    (h_last, _), _ = lax.scan(
        step,
        (jnp.zeros((B, H), jnp.float32), jnp.zeros((B, H), jnp.float32)),
        jnp.transpose(emb, (1, 0, 2)),
    )
    return h_last @ params["w_fc"] + params["b_fc"]


def make_params(key, vocab_size, embedding_dim, hidden_size, num_classes):
    # Fused layout: W_ih = torch weight_ih_l0.T (E, 4H), W_hh = weight_hh_l0.T
    # (H, 4H), b = b_ih + b_hh (1, 4H), w_fc = fc.weight.T (H, C).
    ks = jax.random.split(key, 7)
    E, H, C = embedding_dim, hidden_size, num_classes
    emb = 0.1 * jax.random.normal(ks[0], (vocab_size, E), jnp.float32)
    emb = emb.at[0].set(0.0)  # padding_idx=0
    w_ih = 0.1 * jax.random.normal(ks[1], (E, 4 * H), jnp.float32)
    w_hh = 0.1 * jax.random.normal(ks[2], (H, 4 * H), jnp.float32)
    b_ih = 0.1 * jax.random.normal(ks[3], (1, 4 * H), jnp.float32)
    b_hh = 0.1 * jax.random.normal(ks[4], (1, 4 * H), jnp.float32)
    w_fc = 0.1 * jax.random.normal(ks[5], (H, C), jnp.float32)
    b_fc = 0.1 * jax.random.normal(ks[6], (1, C), jnp.float32)
    return {
        "embedding": emb,
        "w_ih": w_ih,
        "w_hh": w_hh,
        "b": b_ih + b_hh,  # LSTM adds the two biases
        "w_fc": w_fc,
        "b_fc": b_fc,
    }


if __name__ == "__main__":
    VOCAB, EMB_DIM, HIDDEN, NUM_CLASSES = 64, 32, 32, 2
    BATCH, SEQ = 2, 8

    key = jax.random.PRNGKey(0)
    pkey, dkey, dkey2 = jax.random.split(key, 3)
    params = make_params(pkey, VOCAB, EMB_DIM, HIDDEN, NUM_CLASSES)

    input_ids = jax.random.randint(dkey, (BATCH, SEQ), 0, VOCAB, dtype=jnp.int32)

    # Exact f32 path against the reference.
    logits = comment_classifier_forward(input_ids, params,
                                        compute_dtype=jnp.float32)
    logits = jax.block_until_ready(logits)
    ref = jax.block_until_ready(reference_forward(input_ids, params))
    assert logits.shape == (BATCH, NUM_CLASSES)
    assert jnp.allclose(logits, ref, atol=1e-4, rtol=1e-4)

    # Default bf16-MXU path; also exercises multiple time chunks, last-chunk
    # time masking, and the interleaved batch sub-chains.
    ids2 = jax.random.randint(dkey2, (4, 11), 0, VOCAB, dtype=jnp.int32)
    logits2 = comment_classifier_forward(ids2, params, time_chunk=8)
    logits2 = jax.block_until_ready(logits2)
    ref2 = jax.block_until_ready(reference_forward(ids2, params))
    assert logits2.shape == (4, NUM_CLASSES)
    assert jnp.allclose(logits2, ref2, atol=5e-2, rtol=5e-2)

    print("KERNEL_OK")
</pallas_src>

<mosaic_0001>
module attributes {stable_mosaic.version = 11 : i64} {
  func.func @kernel(%arg0: i32, %arg1: i32, %arg2: memref<8x8x32xf32, #tpu.memory_space<vmem>>, %arg3: memref<32x128xf32, #tpu.memory_space<vmem>>, %arg4: memref<1x128xf32, #tpu.memory_space<vmem>>, %arg5: memref<32x128xf32, #tpu.memory_space<vmem>>, %arg6: memref<32x128xf32, #tpu.memory_space<vmem>>, %arg7: memref<1x128xf32, #tpu.memory_space<vmem>>, %arg8: memref<8x128xf32, #tpu.memory_space<vmem>>, %arg9: memref<8x8x128xf32, #tpu.memory_space<vmem>>, %arg10: memref<8x32xf32, #tpu.memory_space<vmem>>, %arg11: memref<8x32xf32, #tpu.memory_space<vmem>>) attributes {dimension_semantics = [#tpu.dimension_semantics<parallel>, #tpu.dimension_semantics<arbitrary>], iteration_bounds = array<i64: 1, 1>, scalar_prefetch = 0 : i64, scratch_operands = 3 : i64, tpu.core_type = #tpu.core_type<tc>, window_params = [{transform_indices = @transform_0, window_bounds = array<i64: 8, 8, 32>}, {pipeline_mode = #tpu.pipeline_mode<synchronous>, transform_indices = @transform_1, window_bounds = array<i64: 32, 128>}, {pipeline_mode = #tpu.pipeline_mode<synchronous>, transform_indices = @transform_2, window_bounds = array<i64: 1, 128>}, {pipeline_mode = #tpu.pipeline_mode<synchronous>, transform_indices = @transform_3, window_bounds = array<i64: 32, 128>}, {pipeline_mode = #tpu.pipeline_mode<synchronous>, transform_indices = @transform_4, window_bounds = array<i64: 32, 128>}, {pipeline_mode = #tpu.pipeline_mode<synchronous>, transform_indices = @transform_5, window_bounds = array<i64: 1, 128>}, {transform_indices = @transform_6, window_bounds = array<i64: 8, 128>}]} {
    %c0_i32 = arith.constant 0 : i32
    %0 = arith.cmpi eq, %arg1, %c0_i32 : i32
    %1 = arith.extui %0 : i1 to i32
    %c0_i32_0 = arith.constant 0 : i32
    %2 = arith.cmpi ne, %1, %c0_i32_0 : i32
    scf.if %2 {
      %cst_55 = arith.constant 0.000000e+00 : f32
      %188 = vector.broadcast %cst_55 : f32 to vector<8x32xf32>
      %c0_56 = arith.constant 0 : index
      %c0_57 = arith.constant 0 : index
      %189 = vector.load %arg10[%c0_56, %c0_57] : memref<8x32xf32, #tpu.memory_space<vmem>>, vector<8x32xf32>
      tpu.vector_store %arg10[%c0_56, %c0_57], %188 {strides = array<i32>} : memref<8x32xf32, #tpu.memory_space<vmem>>, vector<8x32xf32>,
      %cst_58 = arith.constant 0.000000e+00 : f32
      %190 = vector.broadcast %cst_58 : f32 to vector<8x32xf32>
      %c0_59 = arith.constant 0 : index
      %c0_60 = arith.constant 0 : index
      %191 = vector.load %arg11[%c0_59, %c0_60] : memref<8x32xf32, #tpu.memory_space<vmem>>, vector<8x32xf32>
      tpu.vector_store %arg11[%c0_59, %c0_60], %190 {strides = array<i32>} : memref<8x32xf32, #tpu.memory_space<vmem>>, vector<8x32xf32>,
    } else {
    }
    %c0 = arith.constant 0 : index
    %c0_1 = arith.constant 0 : index
    %c0_2 = arith.constant 0 : index
    %3 = vector.load %arg2[%c0, %c0_1, %c0_2] : memref<8x8x32xf32, #tpu.memory_space<vmem>>, vector<8x8x32xf32>
    %4 = vector.shape_cast %3 : vector<8x8x32xf32> to vector<64x32xf32>
    %c0_3 = arith.constant 0 : index
    %c0_4 = arith.constant 0 : index
    %5 = vector.load %arg3[%c0_3, %c0_4] : memref<32x128xf32, #tpu.memory_space<vmem>>, vector<32x128xf32>
    %cst = arith.constant dense<0.000000e+00> : vector<64x128xf32>
    %6 = tpu.matmul %4, %5, %cst {dimension_numbers = #tpu.dot_dimension_numbers<[1], [0], [0], [1], [0, 0, 1, 1], [], []>} : vector<64x32xf32>, vector<32x128xf32>, vector<64x128xf32> -> vector<64x128xf32>
    %c0_5 = arith.constant 0 : index
    %c0_6 = arith.constant 0 : index
    %7 = vector.load %arg4[%c0_5, %c0_6] : memref<1x128xf32, #tpu.memory_space<vmem>>, vector<1x128xf32>
    %8 = vector.broadcast %7 : vector<1x128xf32> to vector<64x128xf32>
    %9 = arith.addf %6, %8 : vector<64x128xf32>
    %10 = vector.shape_cast %9 : vector<64x128xf32> to vector<8x8x128xf32>
    %c0_7 = arith.constant 0 : index
    %c0_8 = arith.constant 0 : index
    %c0_9 = arith.constant 0 : index
    %11 = vector.load %arg9[%c0_7, %c0_8, %c0_9] : memref<8x8x128xf32, #tpu.memory_space<vmem>>, vector<8x8x128xf32>
    tpu.vector_store %arg9[%c0_7, %c0_8, %c0_9], %10 {strides = array<i32>} : memref<8x8x128xf32, #tpu.memory_space<vmem>>, vector<8x8x128xf32>,
    %c0_10 = arith.constant 0 : index
    %c0_11 = arith.constant 0 : index
    %12 = vector.load %arg5[%c0_10, %c0_11] : memref<32x128xf32, #tpu.memory_space<vmem>>, vector<32x128xf32>
    %c0_12 = arith.constant 0 : index
    %c0_13 = arith.constant 0 : index
    %13 = vector.load %arg10[%c0_12, %c0_13] : memref<8x32xf32, #tpu.memory_space<vmem>>, vector<8x32xf32>
    %c0_14 = arith.constant 0 : index
    %c0_15 = arith.constant 0 : index
    %14 = vector.load %arg11[%c0_14, %c0_15] : memref<8x32xf32, #tpu.memory_space<vmem>>, vector<8x32xf32>
    %c0_i32_16 = arith.constant 0 : i32
    %15 = arith.index_cast %c0_i32_16 : i32 to index
    %c0_17 = arith.constant 0 : index
    %c0_18 = arith.constant 0 : index
    %16 = vector.load %arg9[%15, %c0_17, %c0_18] : memref<8x8x128xf32, #tpu.memory_space<vmem>>, vector<1x8x128xf32>
    %17 = vector.shape_cast %16 : vector<1x8x128xf32> to vector<8x128xf32>
    %cst_19 = arith.constant dense<0.000000e+00> : vector<8x128xf32>
    %18 = tpu.matmul %13, %12, %cst_19 {dimension_numbers = #tpu.dot_dimension_numbers<[1], [0], [0], [1], [0, 0, 1, 1], [], []>} : vector<8x32xf32>, vector<32x128xf32>, vector<8x128xf32> -> vector<8x128xf32>
    %19 = arith.addf %17, %18 : vector<8x128xf32>
    %20 = vector.extract_strided_slice %19 {offsets = [0, 0], sizes = [8, 96], strides = [1, 1]} : vector<8x128xf32> to vector<8x96xf32>
    %21 = arith.negf %20 : vector<8x96xf32>
    %22 = math.exp %21 : vector<8x96xf32>
    %cst_20 = arith.constant 1.000000e+00 : f32
    %23 = vector.broadcast %cst_20 : f32 to vector<8x96xf32>
    %24 = arith.addf %23, %22 : vector<8x96xf32>
    %25 = arith.divf %23, %24 : vector<8x96xf32>
    %26 = vector.extract_strided_slice %25 {offsets = [0, 0], sizes = [8, 32], strides = [1, 1]} : vector<8x96xf32> to vector<8x32xf32>
    %27 = vector.extract_strided_slice %25 {offsets = [0, 32], sizes = [8, 32], strides = [1, 1]} : vector<8x96xf32> to vector<8x32xf32>
    %28 = vector.extract_strided_slice %25 {offsets = [0, 64], sizes = [8, 32], strides = [1, 1]} : vector<8x96xf32> to vector<8x32xf32>
    %29 = vector.extract_strided_slice %19 {offsets = [0, 96], sizes = [8, 32], strides = [1, 1]} : vector<8x128xf32> to vector<8x32xf32>
    %30 = math.tanh %29 : vector<8x32xf32>
    %31 = arith.mulf %27, %14 : vector<8x32xf32>
    %32 = arith.mulf %26, %30 : vector<8x32xf32>
    %33 = arith.addf %31, %32 : vector<8x32xf32>
    %34 = math.tanh %33 : vector<8x32xf32>
    %35 = arith.mulf %28, %34 : vector<8x32xf32>
    %c1_i32 = arith.constant 1 : i32
    %36 = arith.index_cast %c1_i32 : i32 to index
    %c0_21 = arith.constant 0 : index
    %c0_22 = arith.constant 0 : index
    %37 = vector.load %arg9[%36, %c0_21, %c0_22] : memref<8x8x128xf32, #tpu.memory_space<vmem>>, vector<1x8x128xf32>
    %38 = vector.shape_cast %37 : vector<1x8x128xf32> to vector<8x128xf32>
    %cst_23 = arith.constant dense<0.000000e+00> : vector<8x128xf32>
    %39 = tpu.matmul %35, %12, %cst_23 {dimension_numbers = #tpu.dot_dimension_numbers<[1], [0], [0], [1], [0, 0, 1, 1], [], []>} : vector<8x32xf32>, vector<32x128xf32>, vector<8x128xf32> -> vector<8x128xf32>
    %40 = arith.addf %38, %39 : vector<8x128xf32>
    %41 = vector.extract_strided_slice %40 {offsets = [0, 0], sizes = [8, 96], strides = [1, 1]} : vector<8x128xf32> to vector<8x96xf32>
    %42 = arith.negf %41 : vector<8x96xf32>
    %43 = math.exp %42 : vector<8x96xf32>
    %cst_24 = arith.constant 1.000000e+00 : f32
    %44 = vector.broadcast %cst_24 : f32 to vector<8x96xf32>
    %45 = arith.addf %44, %43 : vector<8x96xf32>
    %46 = arith.divf %44, %45 : vector<8x96xf32>
    %47 = vector.extract_strided_slice %46 {offsets = [0, 0], sizes = [8, 32], strides = [1, 1]} : vector<8x96xf32> to vector<8x32xf32>
    %48 = vector.extract_strided_slice %46 {offsets = [0, 32], sizes = [8, 32], strides = [1, 1]} : vector<8x96xf32> to vector<8x32xf32>
    %49 = vector.extract_strided_slice %46 {offsets = [0, 64], sizes = [8, 32], strides = [1, 1]} : vector<8x96xf32> to vector<8x32xf32>
    %50 = vector.extract_strided_slice %40 {offsets = [0, 96], sizes = [8, 32], strides = [1, 1]} : vector<8x128xf32> to vector<8x32xf32>
    %51 = math.tanh %50 : vector<8x32xf32>
    %52 = arith.mulf %48, %33 : vector<8x32xf32>
    %53 = arith.mulf %47, %51 : vector<8x32xf32>
    %54 = arith.addf %52, %53 : vector<8x32xf32>
    %55 = math.tanh %54 : vector<8x32xf32>
    %56 = arith.mulf %49, %55 : vector<8x32xf32>
    %c2_i32 = arith.constant 2 : i32
    %57 = arith.index_cast %c2_i32 : i32 to index
    %c0_25 = arith.constant 0 : index
    %c0_26 = arith.constant 0 : index
    %58 = vector.load %arg9[%57, %c0_25, %c0_26] : memref<8x8x128xf32, #tpu.memory_space<vmem>>, vector<1x8x128xf32>
    %59 = vector.shape_cast %58 : vector<1x8x128xf32> to vector<8x128xf32>
    %cst_27 = arith.constant dense<0.000000e+00> : vector<8x128xf32>
    %60 = tpu.matmul %56, %12, %cst_27 {dimension_numbers = #tpu.dot_dimension_numbers<[1], [0], [0], [1], [0, 0, 1, 1], [], []>} : vector<8x32xf32>, vector<32x128xf32>, vector<8x128xf32> -> vector<8x128xf32>
    %61 = arith.addf %59, %60 : vector<8x128xf32>
    %62 = vector.extract_strided_slice %61 {offsets = [0, 0], sizes = [8, 96], strides = [1, 1]} : vector<8x128xf32> to vector<8x96xf32>
    %63 = arith.negf %62 : vector<8x96xf32>
    %64 = math.exp %63 : vector<8x96xf32>
    %cst_28 = arith.constant 1.000000e+00 : f32
    %65 = vector.broadcast %cst_28 : f32 to vector<8x96xf32>
    %66 = arith.addf %65, %64 : vector<8x96xf32>
    %67 = arith.divf %65, %66 : vector<8x96xf32>
    %68 = vector.extract_strided_slice %67 {offsets = [0, 0], sizes = [8, 32], strides = [1, 1]} : vector<8x96xf32> to vector<8x32xf32>
    %69 = vector.extract_strided_slice %67 {offsets = [0, 32], sizes = [8, 32], strides = [1, 1]} : vector<8x96xf32> to vector<8x32xf32>
    %70 = vector.extract_strided_slice %67 {offsets = [0, 64], sizes = [8, 32], strides = [1, 1]} : vector<8x96xf32> to vector<8x32xf32>
    %71 = vector.extract_strided_slice %61 {offsets = [0, 96], sizes = [8, 32], strides = [1, 1]} : vector<8x128xf32> to vector<8x32xf32>
    %72 = math.tanh %71 : vector<8x32xf32>
    %73 = arith.mulf %69, %54 : vector<8x32xf32>
    %74 = arith.mulf %68, %72 : vector<8x32xf32>
    %75 = arith.addf %73, %74 : vector<8x32xf32>
    %76 = math.tanh %75 : vector<8x32xf32>
    %77 = arith.mulf %70, %76 : vector<8x32xf32>
    %c3_i32 = arith.constant 3 : i32
    %78 = arith.index_cast %c3_i32 : i32 to index
    %c0_29 = arith.constant 0 : index
    %c0_30 = arith.constant 0 : index
    %79 = vector.load %arg9[%78, %c0_29, %c0_30] : memref<8x8x128xf32, #tpu.memory_space<vmem>>, vector<1x8x128xf32>
    %80 = vector.shape_cast %79 : vector<1x8x128xf32> to vector<8x128xf32>
    %cst_31 = arith.constant dense<0.000000e+00> : vector<8x128xf32>
    %81 = tpu.matmul %77, %12, %cst_31 {dimension_numbers = #tpu.dot_dimension_numbers<[1], [0], [0], [1], [0, 0, 1, 1], [], []>} : vector<8x32xf32>, vector<32x128xf32>, vector<8x128xf32> -> vector<8x128xf32>
    %82 = arith.addf %80, %81 : vector<8x128xf32>
    %83 = vector.extract_strided_slice %82 {offsets = [0, 0], sizes = [8, 96], strides = [1, 1]} : vector<8x128xf32> to vector<8x96xf32>
    %84 = arith.negf %83 : vector<8x96xf32>
    %85 = math.exp %84 : vector<8x96xf32>
    %cst_32 = arith.constant 1.000000e+00 : f32
    %86 = vector.broadcast %cst_32 : f32 to vector<8x96xf32>
    %87 = arith.addf %86, %85 : vector<8x96xf32>
    %88 = arith.divf %86, %87 : vector<8x96xf32>
    %89 = vector.extract_strided_slice %88 {offsets = [0, 0], sizes = [8, 32], strides = [1, 1]} : vector<8x96xf32> to vector<8x32xf32>
    %90 = vector.extract_strided_slice %88 {offsets = [0, 32], sizes = [8, 32], strides = [1, 1]} : vector<8x96xf32> to vector<8x32xf32>
    %91 = vector.extract_strided_slice %88 {offsets = [0, 64], sizes = [8, 32], strides = [1, 1]} : vector<8x96xf32> to vector<8x32xf32>
    %92 = vector.extract_strided_slice %82 {offsets = [0, 96], sizes = [8, 32], strides = [1, 1]} : vector<8x128xf32> to vector<8x32xf32>
    %93 = math.tanh %92 : vector<8x32xf32>
    %94 = arith.mulf %90, %75 : vector<8x32xf32>
    %95 = arith.mulf %89, %93 : vector<8x32xf32>
    %96 = arith.addf %94, %95 : vector<8x32xf32>
    %97 = math.tanh %96 : vector<8x32xf32>
    %98 = arith.mulf %91, %97 : vector<8x32xf32>
    %c4_i32 = arith.constant 4 : i32
    %99 = arith.index_cast %c4_i32 : i32 to index
    %c0_33 = arith.constant 0 : index
    %c0_34 = arith.constant 0 : index
    %100 = vector.load %arg9[%99, %c0_33, %c0_34] : memref<8x8x128xf32, #tpu.memory_space<vmem>>, vector<1x8x128xf32>
    %101 = vector.shape_cast %100 : vector<1x8x128xf32> to vector<8x128xf32>
    %cst_35 = arith.constant dense<0.000000e+00> : vector<8x128xf32>
    %102 = tpu.matmul %98, %12, %cst_35 {dimension_numbers = #tpu.dot_dimension_numbers<[1], [0], [0], [1], [0, 0, 1, 1], [], []>} : vector<8x32xf32>, vector<32x128xf32>, vector<8x128xf32> -> vector<8x128xf32>
    %103 = arith.addf %101, %102 : vector<8x128xf32>
    %104 = vector.extract_strided_slice %103 {offsets = [0, 0], sizes = [8, 96], strides = [1, 1]} : vector<8x128xf32> to vector<8x96xf32>
    %105 = arith.negf %104 : vector<8x96xf32>
    %106 = math.exp %105 : vector<8x96xf32>
    %cst_36 = arith.constant 1.000000e+00 : f32
    %107 = vector.broadcast %cst_36 : f32 to vector<8x96xf32>
    %108 = arith.addf %107, %106 : vector<8x96xf32>
    %109 = arith.divf %107, %108 : vector<8x96xf32>
    %110 = vector.extract_strided_slice %109 {offsets = [0, 0], sizes = [8, 32], strides = [1, 1]} : vector<8x96xf32> to vector<8x32xf32>
    %111 = vector.extract_strided_slice %109 {offsets = [0, 32], sizes = [8, 32], strides = [1, 1]} : vector<8x96xf32> to vector<8x32xf32>
    %112 = vector.extract_strided_slice %109 {offsets = [0, 64], sizes = [8, 32], strides = [1, 1]} : vector<8x96xf32> to vector<8x32xf32>
    %113 = vector.extract_strided_slice %103 {offsets = [0, 96], sizes = [8, 32], strides = [1, 1]} : vector<8x128xf32> to vector<8x32xf32>
    %114 = math.tanh %113 : vector<8x32xf32>
    %115 = arith.mulf %111, %96 : vector<8x32xf32>
    %116 = arith.mulf %110, %114 : vector<8x32xf32>
    %117 = arith.addf %115, %116 : vector<8x32xf32>
    %118 = math.tanh %117 : vector<8x32xf32>
    %119 = arith.mulf %112, %118 : vector<8x32xf32>
    %c5_i32 = arith.constant 5 : i32
    %120 = arith.index_cast %c5_i32 : i32 to index
    %c0_37 = arith.constant 0 : index
    %c0_38 = arith.constant 0 : index
    %121 = vector.load %arg9[%120, %c0_37, %c0_38] : memref<8x8x128xf32, #tpu.memory_space<vmem>>, vector<1x8x128xf32>
    %122 = vector.shape_cast %121 : vector<1x8x128xf32> to vector<8x128xf32>
    %cst_39 = arith.constant dense<0.000000e+00> : vector<8x128xf32>
    %123 = tpu.matmul %119, %12, %cst_39 {dimension_numbers = #tpu.dot_dimension_numbers<[1], [0], [0], [1], [0, 0, 1, 1], [], []>} : vector<8x32xf32>, vector<32x128xf32>, vector<8x128xf32> -> vector<8x128xf32>
    %124 = arith.addf %122, %123 : vector<8x128xf32>
    %125 = vector.extract_strided_slice %124 {offsets = [0, 0], sizes = [8, 96], strides = [1, 1]} : vector<8x128xf32> to vector<8x96xf32>
    %126 = arith.negf %125 : vector<8x96xf32>
    %127 = math.exp %126 : vector<8x96xf32>
    %cst_40 = arith.constant 1.000000e+00 : f32
    %128 = vector.broadcast %cst_40 : f32 to vector<8x96xf32>
    %129 = arith.addf %128, %127 : vector<8x96xf32>
    %130 = arith.divf %128, %129 : vector<8x96xf32>
    %131 = vector.extract_strided_slice %130 {offsets = [0, 0], sizes = [8, 32], strides = [1, 1]} : vector<8x96xf32> to vector<8x32xf32>
    %132 = vector.extract_strided_slice %130 {offsets = [0, 32], sizes = [8, 32], strides = [1, 1]} : vector<8x96xf32> to vector<8x32xf32>
    %133 = vector.extract_strided_slice %130 {offsets = [0, 64], sizes = [8, 32], strides = [1, 1]} : vector<8x96xf32> to vector<8x32xf32>
    %134 = vector.extract_strided_slice %124 {offsets = [0, 96], sizes = [8, 32], strides = [1, 1]} : vector<8x128xf32> to vector<8x32xf32>
    %135 = math.tanh %134 : vector<8x32xf32>
    %136 = arith.mulf %132, %117 : vector<8x32xf32>
    %137 = arith.mulf %131, %135 : vector<8x32xf32>
    %138 = arith.addf %136, %137 : vector<8x32xf32>
    %139 = math.tanh %138 : vector<8x32xf32>
    %140 = arith.mulf %133, %139 : vector<8x32xf32>
    %c6_i32 = arith.constant 6 : i32
    %141 = arith.index_cast %c6_i32 : i32 to index
    %c0_41 = arith.constant 0 : index
    %c0_42 = arith.constant 0 : index
    %142 = vector.load %arg9[%141, %c0_41, %c0_42] : memref<8x8x128xf32, #tpu.memory_space<vmem>>, vector<1x8x128xf32>
    %143 = vector.shape_cast %142 : vector<1x8x128xf32> to vector<8x128xf32>
    %cst_43 = arith.constant dense<0.000000e+00> : vector<8x128xf32>
    %144 = tpu.matmul %140, %12, %cst_43 {dimension_numbers = #tpu.dot_dimension_numbers<[1], [0], [0], [1], [0, 0, 1, 1], [], []>} : vector<8x32xf32>, vector<32x128xf32>, vector<8x128xf32> -> vector<8x128xf32>
    %145 = arith.addf %143, %144 : vector<8x128xf32>
    %146 = vector.extract_strided_slice %145 {offsets = [0, 0], sizes = [8, 96], strides = [1, 1]} : vector<8x128xf32> to vector<8x96xf32>
    %147 = arith.negf %146 : vector<8x96xf32>
    %148 = math.exp %147 : vector<8x96xf32>
    %cst_44 = arith.constant 1.000000e+00 : f32
    %149 = vector.broadcast %cst_44 : f32 to vector<8x96xf32>
    %150 = arith.addf %149, %148 : vector<8x96xf32>
    %151 = arith.divf %149, %150 : vector<8x96xf32>
    %152 = vector.extract_strided_slice %151 {offsets = [0, 0], sizes = [8, 32], strides = [1, 1]} : vector<8x96xf32> to vector<8x32xf32>
    %153 = vector.extract_strided_slice %151 {offsets = [0, 32], sizes = [8, 32], strides = [1, 1]} : vector<8x96xf32> to vector<8x32xf32>
    %154 = vector.extract_strided_slice %151 {offsets = [0, 64], sizes = [8, 32], strides = [1, 1]} : vector<8x96xf32> to vector<8x32xf32>
    %155 = vector.extract_strided_slice %145 {offsets = [0, 96], sizes = [8, 32], strides = [1, 1]} : vector<8x128xf32> to vector<8x32xf32>
    %156 = math.tanh %155 : vector<8x32xf32>
    %157 = arith.mulf %153, %138 : vector<8x32xf32>
    %158 = arith.mulf %152, %156 : vector<8x32xf32>
    %159 = arith.addf %157, %158 : vector<8x32xf32>
    %160 = math.tanh %159 : vector<8x32xf32>
    %161 = arith.mulf %154, %160 : vector<8x32xf32>
    %c7_i32 = arith.constant 7 : i32
    %162 = arith.index_cast %c7_i32 : i32 to index
    %c0_45 = arith.constant 0 : index
    %c0_46 = arith.constant 0 : index
    %163 = vector.load %arg9[%162, %c0_45, %c0_46] : memref<8x8x128xf32, #tpu.memory_space<vmem>>, vector<1x8x128xf32>
    %164 = vector.shape_cast %163 : vector<1x8x128xf32> to vector<8x128xf32>
    %cst_47 = arith.constant dense<0.000000e+00> : vector<8x128xf32>
    %165 = tpu.matmul %161, %12, %cst_47 {dimension_numbers = #tpu.dot_dimension_numbers<[1], [0], [0], [1], [0, 0, 1, 1], [], []>} : vector<8x32xf32>, vector<32x128xf32>, vector<8x128xf32> -> vector<8x128xf32>
    %166 = arith.addf %164, %165 : vector<8x128xf32>
    %167 = vector.extract_strided_slice %166 {offsets = [0, 0], sizes = [8, 96], strides = [1, 1]} : vector<8x128xf32> to vector<8x96xf32>
    %168 = arith.negf %167 : vector<8x96xf32>
    %169 = math.exp %168 : vector<8x96xf32>
    %cst_48 = arith.constant 1.000000e+00 : f32
    %170 = vector.broadcast %cst_48 : f32 to vector<8x96xf32>
    %171 = arith.addf %170, %169 : vector<8x96xf32>
    %172 = arith.divf %170, %171 : vector<8x96xf32>
    %173 = vector.extract_strided_slice %172 {offsets = [0, 0], sizes = [8, 32], strides = [1, 1]} : vector<8x96xf32> to vector<8x32xf32>
    %174 = vector.extract_strided_slice %172 {offsets = [0, 32], sizes = [8, 32], strides = [1, 1]} : vector<8x96xf32> to vector<8x32xf32>
    %175 = vector.extract_strided_slice %172 {offsets = [0, 64], sizes = [8, 32], strides = [1, 1]} : vector<8x96xf32> to vector<8x32xf32>
    %176 = vector.extract_strided_slice %166 {offsets = [0, 96], sizes = [8, 32], strides = [1, 1]} : vector<8x128xf32> to vector<8x32xf32>
    %177 = math.tanh %176 : vector<8x32xf32>
    %178 = arith.mulf %174, %159 : vector<8x32xf32>
    %179 = arith.mulf %173, %177 : vector<8x32xf32>
    %180 = arith.addf %178, %179 : vector<8x32xf32>
    %181 = math.tanh %180 : vector<8x32xf32>
    %182 = arith.mulf %175, %181 : vector<8x32xf32>
    %c8_i32 = arith.constant 8 : i32
    %c0_49 = arith.constant 0 : index
    %c0_50 = arith.constant 0 : index
    %183 = vector.load %arg10[%c0_49, %c0_50] : memref<8x32xf32, #tpu.memory_space<vmem>>, vector<8x32xf32>
    tpu.vector_store %arg10[%c0_49, %c0_50], %182 {strides = array<i32>} : memref<8x32xf32, #tpu.memory_space<vmem>>, vector<8x32xf32>,
    %c0_51 = arith.constant 0 : index
    %c0_52 = arith.constant 0 : index
    %184 = vector.load %arg11[%c0_51, %c0_52] : memref<8x32xf32, #tpu.memory_space<vmem>>, vector<8x32xf32>
    tpu.vector_store %arg11[%c0_51, %c0_52], %180 {strides = array<i32>} : memref<8x32xf32, #tpu.memory_space<vmem>>, vector<8x32xf32>,
    %c0_i32_53 = arith.constant 0 : i32
    %185 = arith.cmpi eq, %arg1, %c0_i32_53 : i32
    %186 = arith.extui %185 : i1 to i32
    %c0_i32_54 = arith.constant 0 : i32
    %187 = arith.cmpi ne, %186, %c0_i32_54 : i32
    scf.if %187 {
      %c0_55 = arith.constant 0 : index
      %c0_56 = arith.constant 0 : index
      %188 = vector.load %arg10[%c0_55, %c0_56] : memref<8x32xf32, #tpu.memory_space<vmem>>, vector<8x32xf32>
      %c0_57 = arith.constant 0 : index
      %c0_58 = arith.constant 0 : index
      %189 = vector.load %arg6[%c0_57, %c0_58] : memref<32x128xf32, #tpu.memory_space<vmem>>, vector<32x128xf32>
      %cst_59 = arith.constant dense<0.000000e+00> : vector<8x128xf32>
      %190 = tpu.matmul %188, %189, %cst_59 {dimension_numbers = #tpu.dot_dimension_numbers<[1], [0], [0], [1], [0, 0, 1, 1], [], []>} : vector<8x32xf32>, vector<32x128xf32>, vector<8x128xf32> -> vector<8x128xf32>
      %c0_60 = arith.constant 0 : index
      %c0_61 = arith.constant 0 : index
      %191 = vector.load %arg7[%c0_60, %c0_61] : memref<1x128xf32, #tpu.memory_space<vmem>>, vector<1x128xf32>
      %192 = vector.broadcast %191 : vector<1x128xf32> to vector<8x128xf32>
      %193 = arith.addf %190, %192 : vector<8x128xf32>
      %c0_62 = arith.constant 0 : index
      %c0_63 = arith.constant 0 : index
      %194 = vector.load %arg8[%c0_62, %c0_63] : memref<8x128xf32, #tpu.memory_space<vmem>>, vector<8x128xf32>
      tpu.vector_store %arg8[%c0_62, %c0_63], %193 {strides = array<i32>} : memref<8x128xf32, #tpu.memory_space<vmem>>, vector<8x128xf32>,
    } else {
    }
    return
  }
  func.func @transform_0(%arg0: i32, %arg1: i32) -> (i32, i32, i32) {
    %c0_i32 = arith.constant 0 : i32
    %c0_i32_0 = arith.constant 0 : i32
    return %arg1, %arg0, %c0_i32 : i32, i32, i32
  }
  func.func @transform_1(%arg0: i32, %arg1: i32) -> (i32, i32) {
    %c0_i32 = arith.constant 0 : i32
    %c0_i32_0 = arith.constant 0 : i32
    %c0_i32_1 = arith.constant 0 : i32
    return %c0_i32, %c0_i32_0 : i32, i32
  }
  func.func @transform_2(%arg0: i32, %arg1: i32) -> (i32, i32) {
    %c0_i32 = arith.constant 0 : i32
    %c0_i32_0 = arith.constant 0 : i32
    %c0_i32_1 = arith.constant 0 : i32
    return %c0_i32, %c0_i32_0 : i32, i32
  }
  func.func @transform_3(%arg0: i32, %arg1: i32) -> (i32, i32) {
    %c0_i32 = arith.constant 0 : i32
    %c0_i32_0 = arith.constant 0 : i32
    %c0_i32_1 = arith.constant 0 : i32
    return %c0_i32, %c0_i32_0 : i32, i32
  }
  func.func @transform_4(%arg0: i32, %arg1: i32) -> (i32, i32) {
    %c0_i32 = arith.constant 0 : i32
    %c0_i32_0 = arith.constant 0 : i32
    %c0_i32_1 = arith.constant 0 : i32
    return %c0_i32, %c0_i32_0 : i32, i32
  }
  func.func @transform_5(%arg0: i32, %arg1: i32) -> (i32, i32) {
    %c0_i32 = arith.constant 0 : i32
    %c0_i32_0 = arith.constant 0 : i32
    %c0_i32_1 = arith.constant 0 : i32
    return %c0_i32, %c0_i32_0 : i32, i32
  }
  func.func @transform_6(%arg0: i32, %arg1: i32) -> (i32, i32) {
    %c0_i32 = arith.constant 0 : i32
    %c0_i32_0 = arith.constant 0 : i32
    return %arg0, %c0_i32 : i32, i32
  }
}

</mosaic_0001>

<bundles_post_ra>
// kernel: comment_classifier_forward.1
= control target key start
LH: loop header
LB: loop body
LE: loop exit
PB: predicated region body
PF: predicated region fallthrough
CT: control target
= control target key end

     0   :  { %vm27_vm0 = vcmask 261120   ;;  %v1448_v2 = vmov 0.0|0.0   ;;  %vm1449_vm1 = vmmov 0   ;;  %v1450_v4 = vmov 0.0   ;;  %s1451_s17 = smov 32   ;;  %s1692_s1 = inlined_call_operand.vmem [shape: f32[32,128], index: 1, kind: input, shape index: {}]   ;;  %s1693_s3 = inlined_call_operand.vmem [shape: f32[32,128], index: 3, kind: input, shape index: {}]   ;;  %s1694_s0 = inlined_call_operand.vmem [shape: f32[8,8,32], index: 0, kind: input, shape index: {}]   ;;  %s1695_s2 = inlined_call_operand.vmem [shape: f32[1,128], index: 2, kind: input, shape index: {}]   ;;  %s1696_s4 = inlined_call_operand.vmem [shape: f32[32,128], index: 4, kind: input, shape index: {}]   ;;  %s1697_s5 = inlined_call_operand.vmem [shape: f32[1,128], index: 5, kind: input, shape index: {}]   ;;  %s1698_s6 = inlined_call_operand.vmem [shape: f32[8,128], index: 6, kind: output, shape index: {}]  }
   0x1   :  { %v38_v0 = vld [vmem:[%s1692_s1] sm:$0xff]  ;;  %v39_v1 = vld [vmem:[%s1692_s1 + $0x8] sm:$0xff]  ;;  %1324 = vmatprep.subr.bf16.mxu1 %v1448_v2  ;;  %1225 = vmatprep.mubr.msk.f32.mxu1 %vm1449_vm1, %v1450_v4  ;;  %28 = vst.msk [vmem:[#allocation3] sm:$0xff] %vm27_vm0, %v1450_v4  ;;  %29 = vst.msk [vmem:[#allocation4] sm:$0xff] %vm27_vm0, %v1450_v4 }
   0x2   :  { %v187_v3 = vld [vmem:[%s1693_s3] sm:$0xff]  ;;  %v1316_v5 = vpack.c.bf16 %v39_v1, %v38_v0  ;;  %v188_v6 = vld [vmem:[%s1693_s3 + $0x8] sm:$0xff]  ;;  %v40_v7 = vld [vmem:[%s1692_s1 + $0x10] sm:$0xff] }
   0x3   :  { %v41_v8 = vld [vmem:[%s1692_s1 + $0x18] sm:$0xff]  ;;  %v1514_v9 = vpack.c.bf16 %v188_v6, %v187_v3  ;;  %v30_v11 = vld [vmem:[%s1694_s0] sm:$0xff]  ;;  %v189_v12 = vld [vmem:[%s1693_s3 + $0x10] sm:$0xff] }
   0x4   :  { %v1320_v10 = vpack.c.bf16 %v41_v8, %v40_v7  ;;  %v190_v13 = vld [vmem:[%s1693_s3 + $0x18] sm:$0xff]  ;;  %1317 = vmatprep.subr.bf16.mxu0 %v1316_v5  ;;  %1205 = vmatprep.mubr.msk.f32.mxu0 %vm27_vm0, %v30_v11  ;;  %v31_v15 = vld [vmem:[%s1694_s0 + $0x8] sm:$0xff]  ;;  %v1551_v17 = vld [vmem:[%s1695_s2] ss:$0 sm:$0xff]  ;;  %s1452_s2 = smov 64  }
   0x5   :  { %1319 = vmatpush3.bf16.msra.mxu0 %v1316_v5  ;;  %1326 = vmatpush3.bf16.msra.mxu1 %v1514_v9  ;;  %v1527_v14 = vpack.c.bf16 %v190_v13, %v189_v12  ;;  %v32_v54 = vld [vmem:[%s1694_s0 + $0x10] sm:$0xff]  ;;  %v33_v55 = vld [vmem:[%s1694_s0 + $0x18] sm:$0xff]  ;;  %v34_v56 = vld [vmem:[%s1694_s0 + $0x20] sm:$0xff] }
   0x6   :  { %1321 = vmatprep.subr.bf16.mxu0 %v1320_v10  ;;  %1327 = vmatprep.subr.bf16.mxu1 %v1448_v2  ;;  %v35_v57 = vld [vmem:[%s1694_s0 + $0x28] sm:$0xff]  ;;  %v36_v58 = vld [vmem:[%s1694_s0 + $0x30] sm:$0xff]  ;;  %v37_v59 = vld [vmem:[%s1694_s0 + $0x38] sm:$0xff]  ;;  %s1453_s0 = smov 96  }
   0x8   :  { %v191_v16 = vld [vmem:[#allocation3] sm:$0xff]  ;;  %v192_v25 = vld [vmem:[#allocation4] sm:$0xff] }
   0x9   :  { %1323 = vmatpush3.bf16.msra.mxu0 %v1320_v10  ;;  %1329 = vmatpush3.bf16.msra.mxu1 %v1527_v14 }
   0xa   :  { %1330 = vmatprep.subr.bf16.mxu1 %v1448_v2  ;;  %1336 = vmatprep.subr.bf16.mxu0 %v1448_v2 }
   0xc   :  { %1206 = vmatmul.mubr.msk.f32.vlgmr.msra.gmra.mrb[0].mxu0 %vm27_vm0, %v31_v15  ;;  %1226 = vmatmul.mubr.msk.f32.vlgmr.msra.gmra.mrb[0].mxu1 %vm27_vm0, %v191_v16 }
   0xd   :  { %1332 = vmatpush3.bf16.msra.mxu1 %v1514_v9  ;;  %1236 = vmatprep.mubr.msk.f32.mxu1 %vm1449_vm1, %v1450_v4 }
   0xe   :  { %1333 = vmatprep.subr.bf16.mxu1 %v1448_v2  ;;  %1338 = vmatpush3.bf16.msra.mxu0 %v1514_v9 }
   0xf   :  { %1339 = vmatprep.subr.bf16.mxu0 %v1448_v2  ;;  %1208 = vmatprep.mubr.msk.f32.mxu0 %vm27_vm0, %v32_v54 }
  0x10   :  { %1209 = vmatmul.mubr.msk.f32.gmra.mrb[2].mxu0 %vm27_vm0, %v33_v55 }
  0x11   :  { %1335 = vmatpush3.bf16.msra.mxu1 %v1527_v14  ;;  %1211 = vmatprep.mubr.msk.f32.mxu0 %vm27_vm0, %v34_v56 }
  0x12   :  { %1341 = vmatpush3.bf16.msra.mxu0 %v1527_v14  ;;  %1342 = vmatprep.subr.bf16.mxu1 %v1448_v2 }
  0x13   :  { %1348 = vmatprep.subr.bf16.mxu0 %v1448_v2 }
  0x14   :  { %1212 = vmatmul.mubr.msk.f32.gmra.mrb[4].mxu0 %vm27_vm0, %v35_v57 }
  0x15   :  { %1214 = vmatprep.mubr.msk.f32.mxu0 %vm27_vm0, %v36_v58 }
  0x18   :  { %1215 = vmatmul.mubr.msk.f32.gmra.mrb[6].mxu0 %vm27_vm0, %v37_v59 }
  0x19   :  { %1247 = vmatprep.mubr.msk.f32.mxu0 %vm1449_vm1, %v1450_v4 }
  0xdf   :  { %v1207_v18 = vpop.f32.mrb[0].mxu0  ;;  %v263_v19 = vpop.f32.mrb[0].mxu1 }
  0xe0   :  { %v140_v20 = vpop.f32.mrb[1].mxu0  ;;  %v1227_v21 = vpop.f32.mrb[1].mxu1  ;;  %v146_v40 = vadd.f32 %v1207_v18, %v1551_v17 }
  0xe1   :  { %v141_v22 = vadd.f32 %v1551_v17, %v140_v20 }
  0xe3   :  { %v267_v23 = vadd.f32 %v263_v19, %v141_v22  ;;  %v1210_v63 = vpop.f32.mrb[2].mxu0 }
  0xe4   :  { %v150_v0 = vpop.f32.mrb[3].mxu0 }
  0xe5   :  { %1384 = vtanh.f32 %v267_v23  ;;  %v1123_v26 = vmul.f32 -1.442695, %v267_v23  ;;  %v151_v8 = vadd.f32 %v1551_v17, %v150_v0 }
  0xe7   :  { %1386 = vpow2.f32 %v1123_v26  ;;  %v1597_v1 = vpop.f32.mrb[4].mxu0 }
  0xe8   :  { %v1599_v3 = vpop.f32.mrb[5].mxu0 }
  0xeb   :  { %v1601_v5 = vpop.f32.mrb[6].mxu0 }
  0xec   :  { %v1603_v6 = vpop.f32.mrb[7].mxu0 }
  0xef   :  { %v1385_v24 = vpop.eup %1384 }
  0xf0   :  { %281 = vrot.lane.b32.xlu0 %v1385_v24, %s1451_s17 }
  0xf1   :  { %v1387_v27 = vpop.eup %1386 }
  0xf2   :  { %v271_v28 = vadd.f32 1.0, %v1387_v27 }
  0xf4   :  { %276 = vrot.lane.b32.xlu0 %v192_v25, %s1451_s17  ;;  %1388 = vrcp.f32 %v271_v28 }
  0xfe   :  { %v1389_v29 = vpop.eup %1388 }
 0x162   :  { %v282_v30 = vpop.permute.xlu0 %281 }
 0x163   :  { %v284_v31 = vmul.f32 %v1389_v29, %v282_v30 }
 0x165   :  { %286 = vrot.lane.b32.xlu1 %v284_v31, %s1451_s17 }
 0x166   :  { %v277_v32 = vpop.permute.xlu0 %276 }
 0x167   :  { %v279_v33 = vmul.f32 %v1389_v29, %v277_v32 }
 0x1d7   :  { %v287_v34 = vpop.permute.xlu1 %286 }
 0x1d8   :  { %v289_v35 = vadd.f32 %v287_v34, %v279_v33 }
 0x1da   :  { %1390 = vtanh.f32 %v289_v35 }
 0x1e4   :  { %v1391_v36 = vpop.eup %1390 }
 0x1e5   :  { %292 = vrot.lane.b32.xlu1 %v1391_v36, %s1451_s17 }
 0x257   :  { %v293_v37 = vpop.permute.xlu1 %292 }
 0x258   :  { %v295_v38 = vmul.f32 %v1389_v29, %v293_v37  ;;  %v156_v29 = vadd.f32 %v1210_v63, %v1551_v17 }
 0x25a   :  { %299 = vrot.lane.b32.xlu0 %v295_v38, %s1452_s2 }
 0x2cc   :  { %v300_v39 = vpop.permute.xlu0 %299 }
 0x2cd   :  { %1237 = vmatmul.mubr.msk.f32.vlgmr.msra.gmra.mrb[2].mxu1 %vm27_vm0, %v300_v39 }
 0x2ce   :  { %1344 = vmatpush3.bf16.msra.mxu1 %v1514_v9  ;;  %1258 = vmatprep.mubr.msk.f32.mxu1 %vm1449_vm1, %v1450_v4 }
 0x2cf   :  { %1345 = vmatprep.subr.bf16.mxu1 %v1448_v2 }
 0x2d2   :  { %1347 = vmatpush3.bf16.msra.mxu1 %v1527_v14 }
 0x2d3   :  { %1354 = vmatprep.subr.bf16.mxu1 %v1448_v2 }
 0x3a0   :  { %v369_v41 = vpop.f32.mrb[2].mxu1 }
 0x3a1   :  { %v373_v42 = vadd.f32 %v369_v41, %v146_v40  ;;  %v1238_v43 = vpop.f32.mrb[3].mxu1 }
 0x3a3   :  { %1392 = vtanh.f32 %v373_v42  ;;  %v1125_v45 = vmul.f32 -1.442695, %v373_v42 }
 0x3a5   :  { %1394 = vpow2.f32 %v1125_v45 }
 0x3ad   :  { %v1393_v44 = vpop.eup %1392 }
 0x3ae   :  { %383 = vrot.lane.b32.xlu1 %v1393_v44, %s1451_s17 }
 0x3af   :  { %v1395_v46 = vpop.eup %1394 }
 0x3b0   :  { %v377_v47 = vadd.f32 1.0, %v1395_v46 }
 0x3b2   :  { %1396 = vrcp.f32 %v377_v47  ;;  %v161_v47 = vadd.f32 %v1551_v17, %v1599_v3  ;;  %v166_v3 = vadd.f32 %v1597_v1, %v1551_v17 }
 0x3bc   :  { %v1397_v48 = vpop.eup %1396 }
 0x3bd   :  { %v381_v51 = vmul.f32 %v1397_v48, %v289_v35 }
 0x420   :  { %v384_v49 = vpop.permute.xlu1 %383 }
 0x421   :  { %v386_v50 = vmul.f32 %v1397_v48, %v384_v49 }
 0x423   :  { %388 = vrot.lane.b32.xlu0 %v386_v50, %s1451_s17 }
 0x495   :  { %v389_v52 = vpop.permute.xlu0 %388 }
 0x496   :  { %v391_v53 = vadd.f32 %v389_v52, %v381_v51 }
 0x498   :  { %1398 = vtanh.f32 %v391_v53 }
 0x4a2   :  { %v1399_v60 = vpop.eup %1398 }
 0x4a3   :  { %394 = vrot.lane.b32.xlu1 %v1399_v60, %s1451_s17 }
 0x515   :  { %v395_v61 = vpop.permute.xlu1 %394 }
 0x516   :  { %v397_v62 = vmul.f32 %v1397_v48, %v395_v61 }
 0x518   :  { %401 = vrot.lane.b32.xlu0 %v397_v62, %s1452_s2 }
 0x58a   :  { %v402_v7 = vpop.permute.xlu0 %401 }
 0x58b   :  { %1248 = vmatmul.mubr.msk.f32.vlgmr.msra.gmra.mrb[8].mxu0 %vm27_vm0, %v402_v7 }
 0x58c   :  { %1350 = vmatpush3.bf16.msra.mxu0 %v1514_v9  ;;  %1269 = vmatprep.mubr.msk.f32.mxu0 %vm1449_vm1, %v1450_v4 }
 0x58d   :  { %1351 = vmatprep.subr.bf16.mxu0 %v1448_v2 }
 0x590   :  { %1353 = vmatpush3.bf16.msra.mxu0 %v1527_v14 }
 0x591   :  { %1360 = vmatprep.subr.bf16.mxu0 %v1448_v2 }
 0x65e   :  { %v471_v10 = vpop.f32.mrb[8].mxu0 }
 0x65f   :  { %v475_v11 = vadd.f32 %v471_v10, %v151_v8  ;;  %v1249_v12 = vpop.f32.mrb[9].mxu0 }
 0x661   :  { %1400 = vtanh.f32 %v475_v11  ;;  %v1127_v15 = vmul.f32 -1.442695, %v475_v11 }
 0x663   :  { %1402 = vpow2.f32 %v1127_v15 }
 0x66b   :  { %v1401_v13 = vpop.eup %1400 }
 0x66c   :  { %485 = vrot.lane.b32.xlu1 %v1401_v13, %s1451_s17 }
 0x66d   :  { %v1403_v16 = vpop.eup %1402 }
 0x66e   :  { %v479_v18 = vadd.f32 1.0, %v1403_v16 }
 0x670   :  { %1404 = vrcp.f32 %v479_v18 }
 0x67a   :  { %v1405_v19 = vpop.eup %1404 }
 0x67b   :  { %v483_v22 = vmul.f32 %v1405_v19, %v391_v53 }
 0x6de   :  { %v486_v20 = vpop.permute.xlu1 %485 }
 0x6df   :  { %v488_v21 = vmul.f32 %v1405_v19, %v486_v20 }
 0x6e1   :  { %490 = vrot.lane.b32.xlu0 %v488_v21, %s1451_s17 }
 0x753   :  { %v491_v23 = vpop.permute.xlu0 %490 }
 0x754   :  { %v493_v24 = vadd.f32 %v491_v23, %v483_v22 }
 0x756   :  { %1406 = vtanh.f32 %v493_v24 }
 0x760   :  { %v1407_v25 = vpop.eup %1406 }
 0x761   :  { %496 = vrot.lane.b32.xlu1 %v1407_v25, %s1451_s17 }
 0x7d3   :  { %v497_v26 = vpop.permute.xlu1 %496 }
 0x7d4   :  { %v499_v27 = vmul.f32 %v1405_v19, %v497_v26 }
 0x7d6   :  { %503 = vrot.lane.b32.xlu0 %v499_v27, %s1452_s2 }
 0x848   :  { %v504_v28 = vpop.permute.xlu0 %503 }
 0x849   :  { %1259 = vmatmul.mubr.msk.f32.vlgmr.msra.gmra.mrb[4].mxu1 %vm27_vm0, %v504_v28 }
 0x84a   :  { %1356 = vmatpush3.bf16.msra.mxu1 %v1514_v9  ;;  %1280 = vmatprep.mubr.msk.f32.mxu1 %vm1449_vm1, %v1450_v4 }
 0x84b   :  { %1357 = vmatprep.subr.bf16.mxu1 %v1448_v2 }
 0x84e   :  { %1359 = vmatpush3.bf16.msra.mxu1 %v1527_v14 }
 0x84f   :  { %1366 = vmatprep.subr.bf16.mxu1 %v1448_v2 }
 0x91c   :  { %v573_v30 = vpop.f32.mrb[4].mxu1 }
 0x91d   :  { %v577_v31 = vadd.f32 %v573_v30, %v156_v29  ;;  %v1260_v32 = vpop.f32.mrb[5].mxu1 }
 0x91f   :  { %1408 = vtanh.f32 %v577_v31  ;;  %v1129_v34 = vmul.f32 -1.442695, %v577_v31 }
 0x921   :  { %1410 = vpow2.f32 %v1129_v34 }
 0x929   :  { %v1409_v33 = vpop.eup %1408 }
 0x92a   :  { %587 = vrot.lane.b32.xlu1 %v1409_v33, %s1451_s17 }
 0x92b   :  { %v1411_v35 = vpop.eup %1410 }
 0x92c   :  { %v581_v36 = vadd.f32 1.0, %v1411_v35 }
 0x92e   :  { %1412 = vrcp.f32 %v581_v36 }
 0x938   :  { %v1413_v37 = vpop.eup %1412 }
 0x939   :  { %v585_v40 = vmul.f32 %v1413_v37, %v493_v24  ;;  %v171_v24 = vadd.f32 %v1551_v17, %v1603_v6 }
 0x99c   :  { %v588_v38 = vpop.permute.xlu1 %587 }
 0x99d   :  { %v590_v39 = vmul.f32 %v1413_v37, %v588_v38 }
 0x99f   :  { %592 = vrot.lane.b32.xlu0 %v590_v39, %s1451_s17 }
 0xa11   :  { %v593_v41 = vpop.permute.xlu0 %592 }
 0xa12   :  { %v595_v42 = vadd.f32 %v593_v41, %v585_v40  ;;  %v176_v40 = vadd.f32 %v1601_v5, %v1551_v17 }
 0xa14   :  { %1414 = vtanh.f32 %v595_v42 }
 0xa1e   :  { %v1415_v43 = vpop.eup %1414 }
 0xa1f   :  { %598 = vrot.lane.b32.xlu1 %v1415_v43, %s1451_s17 }
 0xa91   :  { %v599_v44 = vpop.permute.xlu1 %598 }
 0xa92   :  { %v601_v45 = vmul.f32 %v1413_v37, %v599_v44 }
 0xa94   :  { %605 = vrot.lane.b32.xlu0 %v601_v45, %s1452_s2 }
 0xb06   :  { %v606_v46 = vpop.permute.xlu0 %605 }
 0xb07   :  { %1270 = vmatmul.mubr.msk.f32.vlgmr.msra.gmra.mrb[10].mxu0 %vm27_vm0, %v606_v46 }
 0xb08   :  { %1362 = vmatpush3.bf16.msra.mxu0 %v1514_v9  ;;  %1291 = vmatprep.mubr.msk.f32.mxu0 %vm1449_vm1, %v1450_v4 }
 0xb09   :  { %1363 = vmatprep.subr.bf16.mxu0 %v1448_v2 }
 0xb0c   :  { %1365 = vmatpush3.bf16.msra.mxu0 %v1527_v14 }
 0xb0d   :  { %1372 = vmatprep.subr.bf16.mxu0 %v1448_v2 }
 0xbda   :  { %v675_v48 = vpop.f32.mrb[10].mxu0 }
 0xbdb   :  { %v679_v49 = vadd.f32 %v675_v48, %v161_v47  ;;  %v1271_v50 = vpop.f32.mrb[11].mxu0 }
 0xbdd   :  { %1416 = vtanh.f32 %v679_v49  ;;  %v1131_v52 = vmul.f32 -1.442695, %v679_v49 }
 0xbdf   :  { %1418 = vpow2.f32 %v1131_v52 }
 0xbe7   :  { %v1417_v51 = vpop.eup %1416 }
 0xbe8   :  { %689 = vrot.lane.b32.xlu1 %v1417_v51, %s1451_s17 }
 0xbe9   :  { %v1419_v53 = vpop.eup %1418 }
 0xbea   :  { %v683_v54 = vadd.f32 1.0, %v1419_v53  ;;  %v1024_v53 = vld [vmem:[%s1696_s4] sm:$0xff] }
 0xbec   :  { %1420 = vrcp.f32 %v683_v54  ;;  %v1025_v54 = vld [vmem:[%s1696_s4 + $0x8] sm:$0xff] }
 0xbf6   :  { %v1421_v55 = vpop.eup %1420 }
 0xbf7   :  { %v687_v58 = vmul.f32 %v1421_v55, %v595_v42 }
 0xc5a   :  { %v690_v56 = vpop.permute.xlu1 %689 }
 0xc5b   :  { %v692_v57 = vmul.f32 %v1421_v55, %v690_v56  ;;  %v1026_v56 = vld [vmem:[%s1696_s4 + $0x10] sm:$0xff] }
 0xc5d   :  { %694 = vrot.lane.b32.xlu0 %v692_v57, %s1451_s17  ;;  %v1027_v57 = vld [vmem:[%s1696_s4 + $0x18] sm:$0xff] }
 0xccf   :  { %v695_v59 = vpop.permute.xlu0 %694 }
 0xcd0   :  { %v697_v60 = vadd.f32 %v695_v59, %v687_v58  ;;  %v1376_v58 = vpack.c.bf16 %v1027_v57, %v1026_v56 }
 0xcd2   :  { %1422 = vtanh.f32 %v697_v60 }
 0xcdc   :  { %v1423_v61 = vpop.eup %1422 }
 0xcdd   :  { %700 = vrot.lane.b32.xlu1 %v1423_v61, %s1451_s17 }
 0xd4f   :  { %v701_v62 = vpop.permute.xlu1 %700 }
 0xd50   :  { %v703_v63 = vmul.f32 %v1421_v55, %v701_v62  ;;  %v1373_v55 = vpack.c.bf16 %v1025_v54, %v1024_v53 }
 0xd52   :  { %707 = vrot.lane.b32.xlu0 %v703_v63, %s1452_s2 }
 0xdc4   :  { %v708_v0 = vpop.permute.xlu0 %707 }
 0xdc5   :  { %1281 = vmatmul.mubr.msk.f32.vlgmr.msra.gmra.mrb[6].mxu1 %vm27_vm0, %v708_v0  ;;  %v1138_v0 = vld [vmem:[%s1697_s5] ss:$0 sm:$0xff] }
 0xdc6   :  { %1368 = vmatpush3.bf16.msra.mxu1 %v1514_v9  ;;  %1302 = vmatprep.mubr.msk.f32.mxu1 %vm1449_vm1, %v1450_v4 }
 0xdc7   :  { %1369 = vmatprep.subr.bf16.mxu1 %v1448_v2 }
 0xdca   :  { %1371 = vmatpush3.bf16.msra.mxu1 %v1527_v14 }
 0xe98   :  { %v777_v7 = vpop.f32.mrb[6].mxu1 }
 0xe99   :  { %v781_v8 = vadd.f32 %v777_v7, %v166_v3  ;;  %v1282_v10 = vpop.f32.mrb[7].mxu1 }
 0xe9b   :  { %1424 = vtanh.f32 %v781_v8  ;;  %v1133_v12 = vmul.f32 -1.442695, %v781_v8 }
 0xe9d   :  { %1426 = vpow2.f32 %v1133_v12 }
 0xea5   :  { %v1425_v11 = vpop.eup %1424 }
 0xea6   :  { %791 = vrot.lane.b32.xlu1 %v1425_v11, %s1451_s17 }
 0xea7   :  { %v1427_v9 = vpop.eup %1426 }
 0xea8   :  { %v785_v13 = vadd.f32 1.0, %v1427_v9 }
 0xeaa   :  { %1428 = vrcp.f32 %v785_v13 }
 0xeb4   :  { %v1429_v15 = vpop.eup %1428 }
 0xeb5   :  { %v789_v14 = vmul.f32 %v1429_v15, %v697_v60 }
 0xf18   :  { %v792_v16 = vpop.permute.xlu1 %791 }
 0xf19   :  { %v794_v18 = vmul.f32 %v1429_v15, %v792_v16 }
 0xf1b   :  { %796 = vrot.lane.b32.xlu0 %v794_v18, %s1451_s17 }
 0xf8d   :  { %v797_v19 = vpop.permute.xlu0 %796 }
 0xf8e   :  { %v799_v1 = vadd.f32 %v797_v19, %v789_v14 }
 0xf90   :  { %1430 = vtanh.f32 %v799_v1 }
 0xf9a   :  { %v1431_v20 = vpop.eup %1430 }
 0xf9b   :  { %802 = vrot.lane.b32.xlu1 %v1431_v20, %s1451_s17 }
0x100d   :  { %v803_v21 = vpop.permute.xlu1 %802 }
0x100e   :  { %v805_v22 = vmul.f32 %v1429_v15, %v803_v21 }
0x1010   :  { %809 = vrot.lane.b32.xlu0 %v805_v22, %s1452_s2 }
0x1082   :  { %v810_v23 = vpop.permute.xlu0 %809 }
0x1083   :  { %1292 = vmatmul.mubr.msk.f32.vlgmr.msra.gmra.mrb[12].mxu0 %vm27_vm0, %v810_v23 }
0x1084   :  { %1313 = vmatprep.mubr.msk.f32.mxu0 %vm1449_vm1, %v1450_v4  ;;  %1374 = vmatpush3.bf16.msra.mxu0 %v1373_v55 }
0x1085   :  { %1375 = vmatprep.subr.bf16.mxu0 %v1448_v2 }
0x1088   :  { %1377 = vmatpush3.bf16.msra.mxu0 %v1376_v58 }
0x1156   :  { %v879_v25 = vpop.f32.mrb[12].mxu0 }
0x1157   :  { %v883_v26 = vadd.f32 %v879_v25, %v171_v24  ;;  %v1293_v27 = vpop.f32.mrb[13].mxu0 }
0x1159   :  { %1432 = vtanh.f32 %v883_v26  ;;  %v1135_v29 = vmul.f32 -1.442695, %v883_v26 }
0x115b   :  { %1434 = vpow2.f32 %v1135_v29 }
0x1163   :  { %v1433_v28 = vpop.eup %1432 }
0x1164   :  { %893 = vrot.lane.b32.xlu1 %v1433_v28, %s1451_s17 }
0x1165   :  { %v1435_v30 = vpop.eup %1434 }
0x1166   :  { %v887_v31 = vadd.f32 1.0, %v1435_v30 }
0x1168   :  { %1436 = vrcp.f32 %v887_v31 }
0x1172   :  { %v1437_v32 = vpop.eup %1436 }
0x1173   :  { %v891_v4 = vmul.f32 %v1437_v32, %v799_v1 }
0x11d6   :  { %v894_v33 = vpop.permute.xlu1 %893 }
0x11d7   :  { %v896_v34 = vmul.f32 %v1437_v32, %v894_v33 }
0x11d9   :  { %898 = vrot.lane.b32.xlu0 %v896_v34, %s1451_s17 }
0x124b   :  { %v899_v35 = vpop.permute.xlu0 %898 }
0x124c   :  { %v901_v6 = vadd.f32 %v899_v35, %v891_v4 }
0x124e   :  { %1438 = vtanh.f32 %v901_v6 }
0x1258   :  { %v1439_v36 = vpop.eup %1438 }
0x1259   :  { %904 = vrot.lane.b32.xlu1 %v1439_v36, %s1451_s17 }
0x12cb   :  { %v905_v37 = vpop.permute.xlu1 %904 }
0x12cc   :  { %v907_v38 = vmul.f32 %v1437_v32, %v905_v37 }
0x12ce   :  { %911 = vrot.lane.b32.xlu0 %v907_v38, %s1452_s2 }
0x1340   :  { %v912_v39 = vpop.permute.xlu0 %911 }
0x1341   :  { %1303 = vmatmul.mubr.msk.f32.vlgmr.msra.gmra.mrb[8].mxu1 %vm27_vm0, %v912_v39 }
0x1414   :  { %v981_v41 = vpop.f32.mrb[8].mxu1 }
0x1415   :  { %v985_v42 = vadd.f32 %v981_v41, %v176_v40  ;;  %v1304_v43 = vpop.f32.mrb[9].mxu1 }
0x1417   :  { %1440 = vtanh.f32 %v985_v42  ;;  %v1137_v45 = vmul.f32 -1.442695, %v985_v42 }
0x1419   :  { %1442 = vpow2.f32 %v1137_v45 }
0x1421   :  { %v1441_v44 = vpop.eup %1440 }
0x1422   :  { %995 = vrot.lane.b32.xlu1 %v1441_v44, %s1451_s17 }
0x1423   :  { %v1443_v46 = vpop.eup %1442 }
0x1424   :  { %v989_v47 = vadd.f32 1.0, %v1443_v46 }
0x1426   :  { %1444 = vrcp.f32 %v989_v47 }
0x1430   :  { %v1445_v48 = vpop.eup %1444 }
0x1431   :  { %v993_v51 = vmul.f32 %v1445_v48, %v901_v6 }
0x1494   :  { %v996_v49 = vpop.permute.xlu1 %995 }
0x1495   :  { %v998_v50 = vmul.f32 %v1445_v48, %v996_v49 }
0x1497   :  { %1000 = vrot.lane.b32.xlu0 %v998_v50, %s1451_s17 }
0x1509   :  { %v1001_v52 = vpop.permute.xlu0 %1000 }
0x150a   :  { %v1003_v17 = vadd.f32 %v1001_v52, %v993_v51 }
0x150c   :  { %1446 = vtanh.f32 %v1003_v17 }
0x1516   :  { %v1447_v5 = vpop.eup %1446 }
0x1517   :  { %1006 = vrot.lane.b32.xlu1 %v1447_v5, %s1451_s17 }
0x151b   :  { %1016 = vrot.lane.b32.xlu1 %v1003_v17, %s1453_s0 }
0x1589   :  { %v1007_v59 = vpop.permute.xlu1 %1006 }
0x158a   :  { %v1009_v60 = vmul.f32 %v1445_v48, %v1007_v59 }
0x158c   :  { %1011 = vrot.lane.b32.xlu0 %v1009_v60, %s1452_s2 }
0x158d   :  { %v1017_v61 = vpop.permute.xlu1 %1016 }
0x158e   :  { %1019 = vst.msk [vmem:[#allocation4] sm:$0xff] %vm27_vm0, %v1017_v61 }
0x15fe   :  { %v1012_v62 = vpop.permute.xlu0 %1011 }
0x15ff   :  { %1014 = vst.msk [vmem:[#allocation3] sm:$0xff] %vm27_vm0, %v1012_v62 }
0x1606   :  { %v1023_v63 = vld [vmem:[#allocation3] sm:$0xff] }
0x1607   :  { %1314 = vmatmul.mubr.msk.f32.vlgmr.msra.gmra.mrb[14].mxu0 %vm27_vm0, %v1023_v63 }
0x16da   :  { %v1104_v3 = vpop.f32.mrb[14].mxu0 }
0x16db   :  { %v1105_v2 = vadd.f32 %v1138_v0, %v1104_v3  ;;  %v1315_v7 = vpop.f32.mrb[15].mxu0 }
0x16dd   :  { %1108 = vst [vmem:[%s1698_s6] sm:$0xff] %v1105_v2 }

</bundles_post_ra>
